<compile_context>
chip_gen: v7x
topology: tpu7x:2x2x1
jax: 0.10.0
libtpu: 0.0.40
codegen_flags: <defaults>
</compile_context>

<pallas_src>
import jax
import jax.numpy as jnp
from jax.experimental import pallas as pl
from jax.experimental.pallas import tpu as pltpu


def _att_kernel(x_ref, w1_ref, b1_ref, w2_ref, y_ref, attn_ref):
    Bt, S, D = x_ref.shape
    H = w1_ref.shape[1]

    x = x_ref[...]                                   # (Bt, S, D), native dtype
    xf = x.reshape(Bt * S, D)                        # (Bt*S, D)

    # ---- first linear + tanh: native-dtype MXU matmul, f32 accumulate ----
    h = jnp.dot(xf, w1_ref[...], preferred_element_type=jnp.float32)
    h = jnp.tanh(h + b1_ref[...].astype(jnp.float32))            # (Bt*S, H) f32

    # ---- second linear has out_features=1: VPU multiply + lane reduce ----
    w2_row = w2_ref[...].astype(jnp.float32)                     # (1, H)
    scores = jnp.sum(h * w2_row, axis=-1, keepdims=True)         # (Bt*S, 1)
    scores = scores.reshape(Bt, S)                               # (Bt, S) lane-dense
    # b2 omitted on purpose: softmax(scores + c) == softmax(scores).

    # ---- softmax over the sequence (last / lane axis), exact division ----
    m = jnp.max(scores, axis=-1, keepdims=True)                  # (Bt, 1)
    e = jnp.exp(scores - m)                                      # (Bt, S)
    attn = e / jnp.sum(e, axis=-1, keepdims=True)                # (Bt, S) f32
    attn_ref[...] = attn.astype(attn_ref.dtype)

    # ---- y[b, :] = sum_s attn[b, s] * x[b, s, :] via batched dot ----
    p = attn.astype(x.dtype)[:, None, :]                         # (Bt, 1, S)
    y = jnp.einsum("bqs,bsd->bqd", p, x,
                   preferred_element_type=jnp.float32)           # (Bt, 1, D) f32
    y_ref[...] = y[:, 0, :].astype(y_ref.dtype)


def _chip_info():
    """(usable VMEM budget in bytes, number of TensorCores per chip)."""
    try:
        kind = jax.devices()[0].device_kind.lower()
    except Exception:
        kind = ""
    if "v7" in kind:
        return 48 * 1024 * 1024, 2        # 64 MiB VMEM per TC, 2 TCs
    if "v5" in kind or "v6" in kind:
        return 96 * 1024 * 1024, 1        # 128 MiB VMEM, 1 TC
    return 48 * 1024 * 1024, 1            # conservative default


def _vmem_per_step(bt, S, D, H, x_itemsize):
    """Honest per-step VMEM estimate: 2x-buffered I/O + weights + f32 temps."""
    x_blk = 2 * bt * S * D * x_itemsize          # double-buffered x input
    y_blk = 2 * bt * D * x_itemsize              # double-buffered y output
    attn_blk = 2 * bt * S * 4                    # double-buffered f32 attn output
    weights = D * H * 4 + 2 * H * 4              # resident W1, b1, W2 (<= f32)
    h_tmp = bt * S * H * 4                       # f32 h
    misc = 4 * bt * S * 4                        # scores / exp / softmax temps
    return x_blk + y_blk + attn_blk + weights + h_tmp + misc


def _choose_block_b(B, S, D, H, x_itemsize, *, vmem_budget, num_cores,
                    target_rows=1024):
    """Pick batch rows per grid step.

    Only multiples of 8 that divide B (or B itself) are valid so the y / attn
    output blocks never put a sub-8, non-full block on the sublane axis.
    Largest block that fits the VMEM budget wins; on dual-TC parts (v7x) we
    split to an even grid when each half still carries meaningful MXU work.
    """
    cands = sorted({B} | {bt for bt in range(8, B, 8) if B % bt == 0})
    fits = [bt for bt in cands
            if _vmem_per_step(bt, S, D, H, x_itemsize) <= vmem_budget]
    if not fits:
        fits = [cands[0]]
    bt = fits[-1]
    if num_cores >= 2 and bt == B and B > 1:
        halves = [c for c in fits if c < B and (B // c) % 2 == 0]
        if halves and halves[-1] * S >= max(target_rows // 2, 8 * S):
            bt = halves[-1]
    return bt


def att_layer(x, w1, b1, w2, b2, *, block_b=None):
    """x: (B, S, D); w1: (D, H); b1: (1, H); w2: (H, 1); b2: (1, 1).

    Returns (y, attention_weight) with shapes (B, D) and (B, S, 1).
    """
    B, S, D = x.shape
    H = w1.shape[1]
    del b2  # cancels under softmax (shift invariance); no effect on outputs

    vmem_budget, num_cores = _chip_info()
    if block_b is None:
        block_b = _choose_block_b(B, S, D, H, jnp.dtype(x.dtype).itemsize,
                                  vmem_budget=vmem_budget, num_cores=num_cores)
    assert B % block_b == 0, "batch must be divisible by block_b"
    assert block_b == B or block_b % 8 == 0, "block_b must be 8-aligned or == B"

    # Lay w2 out as a lane-dense (1, H) row for the in-kernel VPU reduce.
    w2_row = w2.reshape(1, H)

    grid_spec = pltpu.PrefetchScalarGridSpec(
        num_scalar_prefetch=0,
        grid=(B // block_b,),
        in_specs=[
            pl.BlockSpec((block_b, S, D), lambda b: (b, 0, 0)),  # x block
            pl.BlockSpec((D, H), lambda b: (0, 0)),              # W1 (resident)
            pl.BlockSpec((1, H), lambda b: (0, 0)),              # b1 (resident)
            pl.BlockSpec((1, H), lambda b: (0, 0)),              # W2 row (resident)
        ],
        out_specs=[
            pl.BlockSpec((block_b, D), lambda b: (b, 0)),        # y slab
            pl.BlockSpec((block_b, S), lambda b: (b, 0)),        # attn, lane-dense
        ],
    )

    y, attn = pl.pallas_call(
        _att_kernel,
        out_shape=(
            jax.ShapeDtypeStruct((B, D), x.dtype),
            jax.ShapeDtypeStruct((B, S), jnp.float32),
        ),
        grid_spec=grid_spec,
        compiler_params=pltpu.CompilerParams(
            dimension_semantics=("parallel",),
            vmem_limit_bytes=int(vmem_budget),
        ),
    )(x, w1, b1, w2_row)

    # torch returns attention_weight with a trailing singleton dim.
    return y, attn[:, :, None]


def _reference(x, w1, b1, w2, b2):
    # Plain-JAX reference mirroring the PyTorch forward (includes b2).
    h = jnp.tanh(jnp.einsum("bsd,dh->bsh", x, w1) + b1[0])
    scores = jnp.einsum("bsh,ho->bso", h, w2)[..., 0] + b2[0, 0]   # (B, S)
    attn = jax.nn.softmax(scores, axis=-1)[..., None]              # (B, S, 1)
    y = jnp.sum(x * attn, axis=1)                                  # (B, D)
    return y, attn


if __name__ == "__main__":
    # Small, deterministic setup consistent with the module:
    #   word_emb_dim=32, attention_hidden_dim=16, batch=2, seq=8
    B, S, D, H = 2, 8, 32, 16

    key = jax.random.PRNGKey(0)
    kx, k1, k2, k3, k4 = jax.random.split(key, 5)

    x = jax.random.normal(kx, (B, S, D), dtype=jnp.float32)
    # Linear(D, H): weight stored as (in, out); bias kept 2D for TPU layout.
    w1 = jax.random.normal(k1, (D, H), dtype=jnp.float32) * (1.0 / D ** 0.5)
    b1 = jax.random.normal(k2, (1, H), dtype=jnp.float32) * 0.02
    # Linear(H, 1)
    w2 = jax.random.normal(k3, (H, 1), dtype=jnp.float32) * (1.0 / H ** 0.5)
    b2 = jax.random.normal(k4, (1, 1), dtype=jnp.float32) * 0.02

    y, attn = att_layer(x, w1, b1, w2, b2)
    jax.block_until_ready((y, attn))

    y_ref, attn_ref = _reference(x, w1, b1, w2, b2)
    assert y.shape == (B, D) and attn.shape == (B, S, 1)
    # Exact softmax division now; tolerance only covers tanh/exp codegen diffs.
    assert jnp.allclose(attn, attn_ref, atol=1e-4, rtol=1e-4)
    assert jnp.allclose(y, y_ref, atol=1e-4, rtol=1e-4)

    print("KERNEL_OK")
</pallas_src>

<mosaic_0001>
module attributes {stable_mosaic.version = 11 : i64} {
  func.func @_att_kernel(%arg0: i32, %arg1: memref<2x8x32xf32, #tpu.memory_space<vmem>>, %arg2: memref<32x16xf32, #tpu.memory_space<vmem>>, %arg3: memref<1x16xf32, #tpu.memory_space<vmem>>, %arg4: memref<1x16xf32, #tpu.memory_space<vmem>>, %arg5: memref<2x32xf32, #tpu.memory_space<vmem>>, %arg6: memref<2x8xf32, #tpu.memory_space<vmem>>) attributes {dimension_semantics = [#tpu.dimension_semantics<parallel>], iteration_bounds = array<i64: 1>, scalar_prefetch = 0 : i64, scratch_operands = 0 : i64, tpu.core_type = #tpu.core_type<tc>, window_params = [{transform_indices = @transform_0, window_bounds = array<i64: 2, 8, 32>}, {pipeline_mode = #tpu.pipeline_mode<synchronous>, transform_indices = @transform_1, window_bounds = array<i64: 32, 16>}, {pipeline_mode = #tpu.pipeline_mode<synchronous>, transform_indices = @transform_2, window_bounds = array<i64: 1, 16>}, {pipeline_mode = #tpu.pipeline_mode<synchronous>, transform_indices = @transform_3, window_bounds = array<i64: 1, 16>}, {transform_indices = @transform_4, window_bounds = array<i64: 2, 32>}, {transform_indices = @transform_5, window_bounds = array<i64: 2, 8>}]} {
    %c0 = arith.constant 0 : index
    %c0_0 = arith.constant 0 : index
    %c0_1 = arith.constant 0 : index
    %0 = vector.load %arg1[%c0, %c0_0, %c0_1] : memref<2x8x32xf32, #tpu.memory_space<vmem>>, vector<2x8x32xf32>
    %1 = vector.shape_cast %0 : vector<2x8x32xf32> to vector<16x32xf32>
    %c0_2 = arith.constant 0 : index
    %c0_3 = arith.constant 0 : index
    %2 = vector.load %arg2[%c0_2, %c0_3] : memref<32x16xf32, #tpu.memory_space<vmem>>, vector<32x16xf32>
    %cst = arith.constant dense<0.000000e+00> : vector<16x16xf32>
    %3 = tpu.matmul %1, %2, %cst {dimension_numbers = #tpu.dot_dimension_numbers<[1], [0], [0], [1], [0, 0, 1, 1], [], []>} : vector<16x32xf32>, vector<32x16xf32>, vector<16x16xf32> -> vector<16x16xf32>
    %c0_4 = arith.constant 0 : index
    %c0_5 = arith.constant 0 : index
    %4 = vector.load %arg3[%c0_4, %c0_5] : memref<1x16xf32, #tpu.memory_space<vmem>>, vector<1x16xf32>
    %5 = vector.broadcast %4 : vector<1x16xf32> to vector<16x16xf32>
    %6 = arith.addf %3, %5 : vector<16x16xf32>
    %7 = math.tanh %6 : vector<16x16xf32>
    %c0_6 = arith.constant 0 : index
    %c0_7 = arith.constant 0 : index
    %8 = vector.load %arg4[%c0_6, %c0_7] : memref<1x16xf32, #tpu.memory_space<vmem>>, vector<1x16xf32>
    %9 = vector.broadcast %8 : vector<1x16xf32> to vector<16x16xf32>
    %10 = arith.mulf %7, %9 : vector<16x16xf32>
    %cst_8 = arith.constant dense<0.000000e+00> : vector<16xf32>
    %11 = vector.multi_reduction <add>, %10, %cst_8 [1] : vector<16x16xf32> to vector<16xf32>
    %12 = vector.shape_cast %11 : vector<16xf32> to vector<16x1xf32>
    %13 = vector.shape_cast %12 : vector<16x1xf32> to vector<2x8xf32>
    %cst_9 = arith.constant dense<0xFF800000> : vector<2xf32>
    %14 = vector.multi_reduction <maximumf>, %13, %cst_9 [1] : vector<2x8xf32> to vector<2xf32>
    %15 = vector.shape_cast %14 : vector<2xf32> to vector<2x1xf32>
    %16 = vector.broadcast %15 : vector<2x1xf32> to vector<2x8xf32>
    %17 = arith.subf %13, %16 : vector<2x8xf32>
    %18 = math.exp %17 : vector<2x8xf32>
    %cst_10 = arith.constant dense<0.000000e+00> : vector<2xf32>
    %19 = vector.multi_reduction <add>, %18, %cst_10 [1] : vector<2x8xf32> to vector<2xf32>
    %20 = vector.shape_cast %19 : vector<2xf32> to vector<2x1xf32>
    %21 = vector.broadcast %20 : vector<2x1xf32> to vector<2x8xf32>
    %22 = arith.divf %18, %21 : vector<2x8xf32>
    %c0_11 = arith.constant 0 : index
    %c0_12 = arith.constant 0 : index
    %23 = vector.load %arg6[%c0_11, %c0_12] : memref<2x8xf32, #tpu.memory_space<vmem>>, vector<2x8xf32>
    tpu.vector_store %arg6[%c0_11, %c0_12], %22 {strides = array<i32>} : memref<2x8xf32, #tpu.memory_space<vmem>>, vector<2x8xf32>,
    %24 = vector.shape_cast %22 : vector<2x8xf32> to vector<2x1x8xf32>
    "tpu.trace_start"() <{level = 10 : i32, message = "bqs,bsd->bqd"}> : () -> ()
    %cst_13 = arith.constant dense<0.000000e+00> : vector<2x1x32xf32>
    %25 = tpu.matmul %24, %0, %cst_13 {dimension_numbers = #tpu.dot_dimension_numbers<[2], [1], [1], [2], [0, 0, 0, 1, 1, 2], [0], [0]>} : vector<2x1x8xf32>, vector<2x8x32xf32>, vector<2x1x32xf32> -> vector<2x1x32xf32>
    "tpu.trace_stop"() : () -> ()
    %26 = vector.shape_cast %25 : vector<2x1x32xf32> to vector<2x32xf32>
    %c0_14 = arith.constant 0 : index
    %c0_15 = arith.constant 0 : index
    %27 = vector.load %arg5[%c0_14, %c0_15] : memref<2x32xf32, #tpu.memory_space<vmem>>, vector<2x32xf32>
    tpu.vector_store %arg5[%c0_14, %c0_15], %26 {strides = array<i32>} : memref<2x32xf32, #tpu.memory_space<vmem>>, vector<2x32xf32>,
    return
  }
  func.func @transform_0(%arg0: i32) -> (i32, i32, i32) {
    %c0_i32 = arith.constant 0 : i32
    %c0_i32_0 = arith.constant 0 : i32
    %c0_i32_1 = arith.constant 0 : i32
    return %arg0, %c0_i32, %c0_i32_0 : i32, i32, i32
  }
  func.func @transform_1(%arg0: i32) -> (i32, i32) {
    %c0_i32 = arith.constant 0 : i32
    %c0_i32_0 = arith.constant 0 : i32
    %c0_i32_1 = arith.constant 0 : i32
    return %c0_i32, %c0_i32_0 : i32, i32
  }
  func.func @transform_2(%arg0: i32) -> (i32, i32) {
    %c0_i32 = arith.constant 0 : i32
    %c0_i32_0 = arith.constant 0 : i32
    %c0_i32_1 = arith.constant 0 : i32
    return %c0_i32, %c0_i32_0 : i32, i32
  }
  func.func @transform_3(%arg0: i32) -> (i32, i32) {
    %c0_i32 = arith.constant 0 : i32
    %c0_i32_0 = arith.constant 0 : i32
    %c0_i32_1 = arith.constant 0 : i32
    return %c0_i32, %c0_i32_0 : i32, i32
  }
  func.func @transform_4(%arg0: i32) -> (i32, i32) {
    %c0_i32 = arith.constant 0 : i32
    %c0_i32_0 = arith.constant 0 : i32
    return %arg0, %c0_i32 : i32, i32
  }
  func.func @transform_5(%arg0: i32) -> (i32, i32) {
    %c0_i32 = arith.constant 0 : i32
    %c0_i32_0 = arith.constant 0 : i32
    return %arg0, %c0_i32 : i32, i32
  }
}

</mosaic_0001>

<bundles_post_ra>
// kernel: tpu_custom_call.1
= control target key start
LH: loop header
LB: loop body
LE: loop exit
PB: predicated region body
PF: predicated region fallthrough
CT: control target
= control target key end

     0   :  { %11 = vsyncpa [#allocation3], 0  ;;  %vm34_vm0 = vcmask 261120   ;;  %s615_s0 = inlined_call_operand.vmem [shape: f32[2,8,32], index: 0, kind: input, shape index: {}]   ;;  %s616_s1 = inlined_call_operand.vmem [shape: f32[32,16], index: 1, kind: input, shape index: {}]   ;;  %s617_s2 = inlined_call_operand.vmem [shape: f32[1,16], index: 2, kind: input, shape index: {}]   ;;  %s618_s3 = inlined_call_operand.vmem [shape: f32[1,16], index: 3, kind: input, shape index: {}]   ;;  %s619_s4 = inlined_call_operand.hbm [shape: f32[2,32], index: 4, kind: output, shape index: {0}]   ;;  %s620_s5 = inlined_call_operand.hbm [shape: f32[2,8], index: 5, kind: output, shape index: {1}]  }
   0x1   :  { %v23_v0 = vld [vmem:[%s616_s1] sm:$0xff]  ;;  %v24_v1 = vld [vmem:[%s616_s1 + $0x8] sm:$0xff]  ;;  %v25_v2 = vld [vmem:[%s616_s1 + $0x10] sm:$0xff] }
   0x2   :  { %v442_v3 = vpack.c.bf16 %v24_v1, %v23_v0  ;;  %v26_v4 = vld [vmem:[%s616_s1 + $0x18] sm:$0xff]  ;;  %v567_v5 = vld [vmem:[%s615_s0] sm:$0xff] }
   0x3   :  { %v446_v6 = vpack.c.bf16 %v26_v4, %v25_v2  ;;  %429 = vmatprep.mubr.msk.f32.mxu0 %vm34_vm0, %v567_v5 }
   0x4   :  { %12 = vsyncpa [#allocation5], 0  ;;  %443 = vmatprep.subr.bf16.mxu0 %v442_v3  ;;  %v573_v7 = vld [vmem:[%s615_s0 + $0x8] sm:$0xff]  ;;  %v405_v8 = vld [vmem:[%s617_s2] ss:$0 sm:$0xff]  ;;  %vm127_vm1 = vcmask 130048   ;;  %v136_v20 = vlaneseq }
   0x5   :  { %445 = vmatpush3.bf16.msra.mxu0 %v442_v3  ;;  %v408_v13 = vld [vmem:[%s618_s3] ss:$0 sm:$0xff]  ;;  %vm146_vm2 = vcmask 1041409   ;;  %vm149_vm3 = vcmask 58368   ;;  %v517_v30 = vmov 0   ;;  %v518_v48 = vmov 0.0  }
   0x6   :  { %447 = vmatprep.subr.bf16.mxu0 %v446_v6  ;;  %v137_v21 = vand.u32 127, %v136_v20  ;;  %v139_v22 = vshrl.u32 %v136_v20, 7  ;;  %456 = vset.pattern.permute.xlu0 %v517_v30  ;;  %vm519_vm4 = vmmov 0   ;;  %vm225_vm5 = vcmask 64512   ;;  %s520_s0 = smov [#allocation4]  }
   0x7   :  { %455 = vset.pattern.permute.xlu1 %v517_v30  ;;  %432 = vmatprep.subr.mxu1 %v518_v48  ;;  %s393_s2 = sshll.u32 %s520_s0, 4  ;;  %s394_s2 = int_to_ptr.vmem [resolvable:$true] %s393_s2 }
   0x8   :  { %v140_v24 = vsub.s32 %v137_v21, %v139_v22  ;;  %v156_v31 = vsub.s32 0, %v139_v22  ;;  %v160_v32 = vsub.s32 1, %v139_v22  ;;  %433 = vmatpush3.msra.mxu1 %v567_v5  ;;  %434 = vmatprep.mubr.msk.f32.mxu1 %vm519_vm4, %v518_v48  ;;  %s469_s3 = scalar_lea.vmem %s394_s2, 32  ;;  %p474_p1 = scmp.lt.s32.totalorder %s394_s2, %s394_s2 }
   0x9   :  { %449 = vmatpush3.bf16.msra.mxu0 %v446_v6  ;;  %437 = vmatprep.subr.mxu1 %v518_v48  ;;  %p470_p0 = scmp.ne.s32.totalorder %s394_s2, %s469_s3  ;;  %p475_p2 = scmp.lt.s32.totalorder %s469_s3, %s469_s3 }
   0xb   :  { %p476_p3 = por %p475_p2, %p474_p1 }
   0xc   :  { %430 = vmatmul.mubr.msk.f32.vlgmr.msra.gmra.mrb[0].mxu0 %vm34_vm0, %v573_v7 }
   0xd   :  { %p477_p4 = pnand %p476_p3, %p470_p0 }
  0xdf   :  { %v431_v9 = vpop.f32.mrb[0].mxu0 }
  0xe0   :  { %v113_v10 = vadd.f32 %v431_v9, %v405_v8  ;;  %v107_v11 = vpop.f32.mrb[1].mxu0 }
  0xe1   :  { %v108_v12 = vadd.f32 %v405_v8, %v107_v11 }
  0xe2   :  { %457 = vtanh.f32 %v113_v10 }
  0xe3   :  { %459 = vtanh.f32 %v108_v12 }
  0xec   :  { %v458_v14 = vpop.eup %457 }
  0xed   :  { %v460_v15 = vpop.eup %459  ;;  %v126_v18 = vmul.f32 %v458_v14, %v408_v13 }
  0xee   :  { %v125_v16 = vmul.f32 %v460_v15, %v408_v13 }
  0xef   :  { %v131_v19 = vsel %vm127_vm1, %v126_v18, 0.0 }
  0xf0   :  { %v128_v17 = vsel %vm127_vm1, %v125_v16, 0.0 }
  0xf1   :  { %129 = vadd.xlane.f32.xlu0 %v128_v17 }
  0xf5   :  { %132 = vadd.xlane.f32.xlu0 %v131_v19 }
 0x17e   :  { %v130_v23 = vpop.xlane.xlu0 %129 }
 0x17f   :  { %v141_v26 = vrot.slane %v130_v23, %v140_v24 }
 0x182   :  { %v133_v25 = vpop.xlane.xlu0 %132 }
 0x183   :  { %v145_v27 = vrot.slane %v133_v25, %v140_v24 }
 0x185   :  { %v147_v28 = vsel %vm146_vm2, %v145_v27, %v141_v26 }
 0x186   :  { %v150_v29 = vsel %vm149_vm3, %v147_v28, -inf }
 0x187   :  { %151 = vmax.xlane.f32.xlu1 %v150_v29 }
 0x214   :  { %v152_v33 = vpop.xlane.xlu1 %151 }
 0x215   :  { %v157_v34 = vrot.slane %v152_v33, %v156_v31  ;;  %v161_v35 = vrot.slane %v152_v33, %v160_v32 }
 0x217   :  { %v164_v36 = vsub.f32 %v130_v23, %v157_v34  ;;  %v165_v37 = vsub.f32 %v133_v25, %v161_v35 }
 0x219   :  { %v166_v38 = vmul.f32 1.442695, %v164_v36  ;;  %v168_v39 = vmul.f32 1.442695, %v165_v37 }
 0x21b   :  { %461 = vpow2.f32 %v166_v38 }
 0x21c   :  { %463 = vpow2.f32 %v168_v39 }
 0x225   :  { %v462_v40 = vpop.eup %461 }
 0x226   :  { %v464_v41 = vpop.eup %463  ;;  %173 = vperm.xlu1 %455, %v462_v40  }
 0x227   :  { %176 = vperm.xlu0 %456, %v464_v41  }
 0x2a5   :  { %v174_v42 = vpop.permute.xlu1 %173 }
 0x2a6   :  { %v177_v43 = vpop.permute.xlu0 %176  ;;  %v181_v44 = vrot.slane %v174_v42, %v140_v24 }
 0x2a7   :  { %v185_v45 = vrot.slane %v177_v43, %v140_v24 }
 0x2a9   :  { %v186_v46 = vsel %vm146_vm2, %v185_v45, %v181_v44 }
 0x2aa   :  { %v188_v47 = vsel %vm149_vm3, %v186_v46, 0.0 }
 0x2ab   :  { %189 = vadd.xlane.f32.xlu1 %v188_v47 }
 0x338   :  { %v190_v49 = vpop.xlane.xlu1 %189 }
 0x339   :  { %v195_v50 = vrot.slane %v190_v49, %v156_v31  ;;  %v199_v51 = vrot.slane %v190_v49, %v160_v32 }
 0x33b   :  { %465 = vrcp.f32 %v195_v50 }
 0x33c   :  { %467 = vrcp.f32 %v199_v51 }
 0x345   :  { %v466_v52 = vpop.eup %465 }
 0x346   :  { %v203_v53 = vmul.f32 %v466_v52, %v462_v40  ;;  %v468_v54 = vpop.eup %467 }
 0x347   :  { %v205_v55 = vmul.f32 %v468_v54, %v464_v41 }
 0x348   :  { %209 = vperm.xlu0 %456, %v203_v53  }
 0x34c   :  { %212 = vperm.xlu0 %456, %v205_v55  }
 0x3c7   :  { %v210_v56 = vpop.permute.xlu0 %209 }
 0x3c8   :  { %v217_v57 = vrot.slane %v210_v56, %v140_v24 }
 0x3ca   :  { %435 = vmatmul.mubr.msk.f32.vlgmr.msra.gmra.mrb[0].mxu1 %vm225_vm5, %v217_v57 }
 0x3cb   :  { %438 = vmatpush3.msra.mxu1 %v573_v7  ;;  %v213_v58 = vpop.permute.xlu0 %212  ;;  %439 = vmatprep.mubr.msk.f32.mxu1 %vm519_vm4, %v518_v48 }
 0x3cc   :  { %v221_v59 = vrot.slane %v213_v58, %v140_v24 }
 0x3ce   :  { %440 = vmatmul.mubr.msk.f32.vlgmr.msra.gmra.mrb[2].mxu1 %vm225_vm5, %v221_v59  ;;  %v222_v60 = vsel %vm146_vm2, %v221_v59, %v217_v57 }
 0x3cf   :  { %224 = vst.msk [vmem:[#allocation4] sm:$0x3] %vm149_vm3, %v222_v60 }
 0x3d0   :  { %480 = shalt.err (!%p477_p4)
}
 0x3d1   :  { %s481_s10 = scalar_lea.hbm %s620_s5, 32 }
 0x3d2   :  { %p482_p5 = scmp.ne.s32.totalorder %s620_s5, %s481_s10  ;;  %p485_p6 = scmp.lt.u32.totalorder %s481_s10, %s620_s5 }
 0x3d4   :  { %p487_p7 = pnand %p485_p6, %p482_p5 }
 0x3d6   :  { %490 = shalt.err (!%p487_p7)
}
 0x3d7   :  { %396 = dma.vmem_to_hbm [thread:$0]  %s394_s2, 32, %s620_s5, [#allocation5]   ;;  %vm375_vm6 = vcmask 254976  }
 0x3d8   :  { %s521_s17 = smov [#allocation2]  }
 0x3d9   :  { %s383_s18 = sshll.u32 %s521_s17, 4  ;;  %s384_s18 = int_to_ptr.vmem [resolvable:$true] %s383_s18 }
 0x3da   :  { %s491_s19 = scalar_lea.vmem %s384_s18, 32  ;;  %p496_p9 = scmp.lt.s32.totalorder %s384_s18, %s384_s18 }
 0x3db   :  { %p492_p8 = scmp.ne.s32.totalorder %s384_s18, %s491_s19  ;;  %p497_p10 = scmp.lt.s32.totalorder %s491_s19, %s491_s19 }
 0x3dd   :  { %p498_p11 = por %p497_p10, %p496_p9 }
 0x3df   :  { %p499_p12 = pnand %p498_p11, %p492_p8 }
 0x49d   :  { %v294_v61 = vpop.f32.mrb[0].mxu1 }
 0x49e   :  { %v436_v62 = vpop.f32.mrb[1].mxu1 }
 0x4a1   :  { %v366_v63 = vpop.f32.mrb[2].mxu1 }
 0x4a2   :  { %v372_v0 = vrot.slane %v366_v63, 7  ;;  %v441_v1 = vpop.f32.mrb[3].mxu1 }
 0x4a4   :  { %v373_v2 = vsel %vm146_vm2, %v372_v0, %v294_v61 }
 0x4a5   :  { %376 = vst.msk [vmem:[#allocation2] sm:$0x3] %vm375_vm6, %v373_v2 }
 0x4a6   :  { %502 = shalt.err (!%p499_p12)
}
 0x4a7   :  { %s503_s21 = scalar_lea.hbm %s619_s4, 32 }
 0x4a8   :  { %p504_p13 = scmp.ne.s32.totalorder %s619_s4, %s503_s21  ;;  %p507_p0 = scmp.lt.u32.totalorder %s503_s21, %s619_s4 }
 0x4aa   :  { %p509_p1 = pnand %p507_p0, %p504_p13 }
 0x4ac   :  { %512 = shalt.err (!%p509_p1)
}
 0x4ad   :  { %386 = dma.vmem_to_hbm [thread:$0]  %s384_s18, 32, %s619_s4, [#allocation3]  }
 0x4ae   :  { %513 = dma.done.wait [#allocation3], 32  }
 0x4af   :  { %514 = vsyncadd [#allocation3], 4294967264 }
 0x4b0   :  { %515 = dma.done.wait [#allocation5], 32  }
 0x4b1   :  { %516 = vsyncadd [#allocation5], 4294967264 }
 0x4b2   :  { %403 = vsyncpa [#allocation3], 1 }
 0x4b3   :  { %404 = vsyncpa [#allocation5], 1 }

</bundles_post_ra>
